<compile_context>
chip_gen: v7x
topology: tpu7x:2x2x1
jax: 0.10.0
libtpu: 0.0.40
codegen_flags: <defaults>
</compile_context>

<pallas_src>
import functools

import jax
import jax.numpy as jnp
from jax.experimental import pallas as pl
from jax.experimental.pallas import tpu as pltpu


def _round_up(x: int, m: int) -> int:
    return ((x + m - 1) // m) * m


# dot_general dimension numbers.
_TN = (((0,), (0,)), ((), ()))   # contract dim 0 of both (transpose-A)
_NT = (((1,), (1,)), ((), ()))   # contract dim 1 of both (transpose-B)
_NN = (((1,), (0,)), ((), ()))   # standard


def _gat_skip_kernel(tgt_ref, src_ref, x_ref, wt_ref, b_ref, a2_ref, out_ref,
                     h_sc, sdst_sc, ssrc_sc, m_sc, l_sc, acc_sc,
                     *, scaling: float, apply_act: bool):
    t = pl.program_id(0)
    n_nodes = x_ref.shape[0]          # padded node count Np
    t_edges = tgt_ref.shape[1]        # edge-tile width tE
    f32 = jnp.float32

    @pl.when(t == 0)
    def _init():
        # h = W x + b  (nn.Linear), and per-node attention scores.
        h = jnp.dot(x_ref[...], wt_ref[...], preferred_element_type=f32) + b_ref[...]
        h_sc[...] = h
        s2 = jnp.dot(h, a2_ref[...], preferred_element_type=f32)   # (Np, 2)
        sdst_sc[...] = s2[:, 0:1]
        ssrc_sc[...] = s2[:, 1:2]
        m_sc[...] = jnp.full_like(m_sc, -1e30)
        l_sc[...] = jnp.zeros_like(l_sc)
        acc_sc[...] = jnp.zeros_like(acc_sc)

    # One-hot connectivity tiles built on the VPU (nodes on sublanes, edges on
    # lanes).  Padded edges carry an out-of-range node id -> all-zero column.
    node_iota = jax.lax.broadcasted_iota(jnp.int32, (n_nodes, t_edges), 0)
    tmask = node_iota == tgt_ref[...]                    # (Np, tE)
    smask = node_iota == src_ref[...]                    # (Np, tE)
    tt = tmask.astype(f32)
    st = smask.astype(f32)

    # e_k = LeakyReLU(s_dst[tgt_k] + s_src[src_k])  -- skinny MXU gathers.
    e = (jax.lax.dot_general(sdst_sc[...], tt, _TN, preferred_element_type=f32)
         + jax.lax.dot_general(ssrc_sc[...], st, _TN, preferred_element_type=f32))
    e = jnp.where(e > 0, e, scaling * e)                 # (1, tE)

    # Online scatter-softmax over edges grouped by target node.
    masked = jnp.where(tmask, e, -1e30)                  # single O(Np*tE) pass
    m_tile = jnp.max(masked, axis=1, keepdims=True)      # (Np, 1)
    m_old = m_sc[...]
    m_new = jnp.maximum(m_old, m_tile)
    corr = jnp.exp(m_old - m_new)                        # (Np, 1)

    m_edge = jax.lax.dot_general(m_new, tt, _TN, preferred_element_type=f32)  # (1, tE)
    p = jnp.exp(e - m_edge)                              # (1, tE), <= 1 for real edges

    l_sc[...] = corr * l_sc[...] + jax.lax.dot_general(
        tt, p, _NT, preferred_element_type=f32)          # (Np, 1)

    # Gather h_j = h[src] and scatter p * h_j into target rows (bf16 operands,
    # f32 accumulation; attention weight folded into the one-hot).
    h_j = jax.lax.dot_general(st.astype(jnp.bfloat16),
                              h_sc[...].astype(jnp.bfloat16), _TN,
                              preferred_element_type=f32)        # (tE, Hp)
    tt_p = (tt * p).astype(jnp.bfloat16)
    acc_sc[...] = corr * acc_sc[...] + jax.lax.dot_general(
        tt_p, h_j.astype(jnp.bfloat16), _NN,
        preferred_element_type=f32)                              # (Np, Hp)

    m_sc[...] = m_new

    @pl.when(t == pl.num_programs(0) - 1)
    def _finalize():
        l = l_sc[...]
        l = jnp.where(l > 0, l, 1.0)                     # isolated target nodes
        out = acc_sc[...] * pl.reciprocal(l, approx=True) + h_sc[...]
        if apply_act:
            out = jnp.where(out > 0, out, jnp.expm1(out))   # ELU(alpha=1)
        out_ref[...] = out.astype(out_ref.dtype)


def _vmem_limit_bytes(Np, F, Hp, tE):
    scratch = (2 * Np * Hp + 4 * Np) * 4
    inputs = (2 * 2 * tE + 2 * Np * F + 2 * F * Hp + 2 * Hp + 4 * Hp) * 4
    outputs = 2 * Np * Hp * 4
    temps = 4 * Np * tE * 4           # one-hot masks + masked-max intermediates
    need = scratch + inputs + outputs + temps
    return int(min(max(2 * need, 16 * 1024 * 1024), 48 * 1024 * 1024))


def gat_skip_forward(x, edge_index, W, b, a, *, scaling=0.2, apply_act=False,
                     edge_tile=512):
    """x: (N, F) float32; edge_index: (2, E) int32 [row0=target, row1=source].

    W: (H, F), b: (H,), a: (2H,)  (nn.Linear weights).  Returns (N, H).
    """
    N, F = x.shape
    H = W.shape[0]
    E = edge_index.shape[1]

    Np = _round_up(N, 8)                                 # sublane-dense node dim
    Hp = _round_up(H, 128)                               # lane-dense hidden dim
    tE = min(_round_up(edge_tile, 128), _round_up(E, 128))
    E_pad = _round_up(E, tE)
    n_tiles = E_pad // tE

    # Node features zero-padded along the node axis to Np.
    xp = jnp.zeros((Np, F), jnp.float32).at[:N, :].set(x.astype(jnp.float32))

    # Parameters, zero-padded along the hidden axis to Hp.
    wt = jnp.zeros((F, Hp), jnp.float32).at[:, :H].set(W.T.astype(jnp.float32))
    b2 = jnp.zeros((1, Hp), jnp.float32).at[0, :H].set(b.astype(jnp.float32))
    a2 = jnp.zeros((Hp, 2), jnp.float32)
    a2 = a2.at[:H, 0].set(a[:H].astype(jnp.float32))     # pairs with h[target]
    a2 = a2.at[:H, 1].set(a[H:].astype(jnp.float32))     # pairs with h[source]

    # Edge indices padded with an out-of-range node id (Np) -> null edges.
    tgt = jnp.pad(edge_index[0].astype(jnp.int32), (0, E_pad - E),
                  constant_values=Np).reshape(1, E_pad)
    src = jnp.pad(edge_index[1].astype(jnp.int32), (0, E_pad - E),
                  constant_values=Np).reshape(1, E_pad)

    kernel = functools.partial(_gat_skip_kernel, scaling=float(scaling),
                               apply_act=bool(apply_act))

    def _full(shape):
        return pl.BlockSpec(shape, lambda t: (0, 0))

    out = pl.pallas_call(
        kernel,
        out_shape=jax.ShapeDtypeStruct((Np, Hp), jnp.float32),
        grid=(n_tiles,),
        in_specs=[
            pl.BlockSpec((1, tE), lambda t: (0, t)),     # target ids
            pl.BlockSpec((1, tE), lambda t: (0, t)),     # source ids
            _full((Np, F)),                              # node features (padded)
            _full((F, Hp)),                              # W^T (padded)
            _full((1, Hp)),                              # bias (padded)
            _full((Hp, 2)),                              # [a_dst | a_src]
        ],
        out_specs=_full((Np, Hp)),
        scratch_shapes=[
            pltpu.VMEM((Np, Hp), jnp.float32),           # h = Wx + b
            pltpu.VMEM((Np, 1), jnp.float32),            # s_dst
            pltpu.VMEM((Np, 1), jnp.float32),            # s_src
            pltpu.VMEM((Np, 1), jnp.float32),            # running max
            pltpu.VMEM((Np, 1), jnp.float32),            # running denom
            pltpu.VMEM((Np, Hp), jnp.float32),           # running aggregate
        ],
        compiler_params=pltpu.CompilerParams(
            dimension_semantics=("arbitrary",),
            vmem_limit_bytes=_vmem_limit_bytes(Np, F, Hp, tE)),
    )(tgt, src, xp, wt, b2, a2)
    return out[:N, :H]


def _reference(x, edge_index, W, b, a, *, scaling, apply_act):
    """Pure-JAX reference of the PyTorch module forward (eval mode)."""
    N = x.shape[0]
    H = W.shape[0]
    h = x @ W.T + b
    tgt, src = edge_index[0], edge_index[1]
    e = jax.nn.leaky_relu(h[tgt] @ a[:H] + h[src] @ a[H:], negative_slope=scaling)
    m = jax.ops.segment_max(e, tgt, num_segments=N)
    p = jnp.exp(e - m[tgt])
    denom = jax.ops.segment_sum(p, tgt, num_segments=N)
    alpha = p / denom[tgt]
    agg = jax.ops.segment_sum(alpha[:, None] * h[src], tgt, num_segments=N)
    out = agg + h
    if apply_act:
        out = jnp.where(out > 0, out, jnp.expm1(out))
    return out


if __name__ == "__main__":
    key = jax.random.PRNGKey(0)
    k_x, k_t, k_s, k_w, k_b, k_a = jax.random.split(key, 6)

    N_NODES = 8          # nodes
    N_FEATS = 4          # n_node_features
    N_HIDDEN = 32        # n_hidden_features
    N_EDGES = 16         # edges

    x = jax.random.normal(k_x, (N_NODES, N_FEATS), dtype=jnp.float32)
    edge_index = jnp.stack(
        [jax.random.randint(k_t, (N_EDGES,), 0, N_NODES, dtype=jnp.int32),
         jax.random.randint(k_s, (N_EDGES,), 0, N_NODES, dtype=jnp.int32)],
        axis=0,
    )

    # Parameter shapes from the module's __init__:
    #   w    : nn.Linear(F, H)   -> weight (H, F), bias (H,)
    #   attn : nn.Linear(2H, 1)  -> weight (1, 2H) flattened to a (2H,)
    w_bound = 1.0 / jnp.sqrt(N_FEATS)
    W = jax.random.uniform(k_w, (N_HIDDEN, N_FEATS), jnp.float32, -w_bound, w_bound)
    b = jax.random.uniform(k_b, (N_HIDDEN,), jnp.float32, -w_bound, w_bound)
    a_bound = 1.0 / jnp.sqrt(2 * N_HIDDEN)
    a = jax.random.uniform(k_a, (2 * N_HIDDEN,), jnp.float32, -a_bound, a_bound)

    out = gat_skip_forward(x, edge_index, W, b, a, scaling=0.2, apply_act=False)
    jax.block_until_ready(out)

    ref = _reference(x, edge_index, W, b, a, scaling=0.2, apply_act=False)
    assert out.shape == (N_NODES, N_HIDDEN)
    assert bool(jnp.all(jnp.isfinite(out)))
    # bf16 MXU operands + approx reciprocal -> loose tolerance.
    assert bool(jnp.allclose(out, ref, atol=5e-2, rtol=5e-2)), \
        float(jnp.max(jnp.abs(out - ref)))
    print("KERNEL_OK")
</pallas_src>

<mosaic_0001>
module attributes {stable_mosaic.version = 11 : i64} {
  func.func @_gat_skip_kernel(%arg0: i32, %arg1: memref<1x128xi32, #tpu.memory_space<vmem>>, %arg2: memref<1x128xi32, #tpu.memory_space<vmem>>, %arg3: memref<8x4xf32, #tpu.memory_space<vmem>>, %arg4: memref<4x128xf32, #tpu.memory_space<vmem>>, %arg5: memref<1x128xf32, #tpu.memory_space<vmem>>, %arg6: memref<128x2xf32, #tpu.memory_space<vmem>>, %arg7: memref<8x128xf32, #tpu.memory_space<vmem>>, %arg8: memref<8x128xf32, #tpu.memory_space<vmem>>, %arg9: memref<8x1xf32, #tpu.memory_space<vmem>>, %arg10: memref<8x1xf32, #tpu.memory_space<vmem>>, %arg11: memref<8x1xf32, #tpu.memory_space<vmem>>, %arg12: memref<8x1xf32, #tpu.memory_space<vmem>>, %arg13: memref<8x128xf32, #tpu.memory_space<vmem>>) attributes {dimension_semantics = [#tpu.dimension_semantics<arbitrary>], iteration_bounds = array<i64: 1>, scalar_prefetch = 0 : i64, scratch_operands = 6 : i64, tpu.core_type = #tpu.core_type<tc>, window_params = [{transform_indices = @transform_0, window_bounds = array<i64: 1, 128>}, {transform_indices = @transform_1, window_bounds = array<i64: 1, 128>}, {pipeline_mode = #tpu.pipeline_mode<synchronous>, transform_indices = @transform_2, window_bounds = array<i64: 8, 4>}, {pipeline_mode = #tpu.pipeline_mode<synchronous>, transform_indices = @transform_3, window_bounds = array<i64: 4, 128>}, {pipeline_mode = #tpu.pipeline_mode<synchronous>, transform_indices = @transform_4, window_bounds = array<i64: 1, 128>}, {pipeline_mode = #tpu.pipeline_mode<synchronous>, transform_indices = @transform_5, window_bounds = array<i64: 128, 2>}, {pipeline_mode = #tpu.pipeline_mode<synchronous>, transform_indices = @transform_6, window_bounds = array<i64: 8, 128>}]} {
    %c0_i32 = arith.constant 0 : i32
    %0 = arith.cmpi eq, %arg0, %c0_i32 : i32
    %1 = arith.extui %0 : i1 to i32
    %c0_i32_0 = arith.constant 0 : i32
    %2 = arith.cmpi ne, %1, %c0_i32_0 : i32
    scf.if %2 {
      %c0_33 = arith.constant 0 : index
      %c0_34 = arith.constant 0 : index
      %60 = vector.load %arg3[%c0_33, %c0_34] : memref<8x4xf32, #tpu.memory_space<vmem>>, vector<8x4xf32>
      %c0_35 = arith.constant 0 : index
      %c0_36 = arith.constant 0 : index
      %61 = vector.load %arg4[%c0_35, %c0_36] : memref<4x128xf32, #tpu.memory_space<vmem>>, vector<4x128xf32>
      %cst_37 = arith.constant dense<0.000000e+00> : vector<8x128xf32>
      %62 = tpu.matmul %60, %61, %cst_37 {dimension_numbers = #tpu.dot_dimension_numbers<[1], [0], [0], [1], [0, 0, 1, 1], [], []>} : vector<8x4xf32>, vector<4x128xf32>, vector<8x128xf32> -> vector<8x128xf32>
      %c0_38 = arith.constant 0 : index
      %c0_39 = arith.constant 0 : index
      %63 = vector.load %arg5[%c0_38, %c0_39] : memref<1x128xf32, #tpu.memory_space<vmem>>, vector<1x128xf32>
      %64 = vector.broadcast %63 : vector<1x128xf32> to vector<8x128xf32>
      %65 = arith.addf %62, %64 : vector<8x128xf32>
      %c0_40 = arith.constant 0 : index
      %c0_41 = arith.constant 0 : index
      %66 = vector.load %arg8[%c0_40, %c0_41] : memref<8x128xf32, #tpu.memory_space<vmem>>, vector<8x128xf32>
      tpu.vector_store %arg8[%c0_40, %c0_41], %65 {strides = array<i32>} : memref<8x128xf32, #tpu.memory_space<vmem>>, vector<8x128xf32>,
      %c0_42 = arith.constant 0 : index
      %c0_43 = arith.constant 0 : index
      %67 = vector.load %arg6[%c0_42, %c0_43] : memref<128x2xf32, #tpu.memory_space<vmem>>, vector<128x2xf32>
      %cst_44 = arith.constant dense<0.000000e+00> : vector<8x2xf32>
      %68 = tpu.matmul %65, %67, %cst_44 {dimension_numbers = #tpu.dot_dimension_numbers<[1], [0], [0], [1], [0, 0, 1, 1], [], []>} : vector<8x128xf32>, vector<128x2xf32>, vector<8x2xf32> -> vector<8x2xf32>
      %69 = vector.extract_strided_slice %68 {offsets = [0, 0], sizes = [8, 1], strides = [1, 1]} : vector<8x2xf32> to vector<8x1xf32>
      %c0_45 = arith.constant 0 : index
      %c0_46 = arith.constant 0 : index
      %70 = vector.load %arg9[%c0_45, %c0_46] : memref<8x1xf32, #tpu.memory_space<vmem>>, vector<8x1xf32>
      tpu.vector_store %arg9[%c0_45, %c0_46], %69 {strides = array<i32>} : memref<8x1xf32, #tpu.memory_space<vmem>>, vector<8x1xf32>,
      %71 = vector.extract_strided_slice %68 {offsets = [0, 1], sizes = [8, 1], strides = [1, 1]} : vector<8x2xf32> to vector<8x1xf32>
      %c0_47 = arith.constant 0 : index
      %c0_48 = arith.constant 0 : index
      %72 = vector.load %arg10[%c0_47, %c0_48] : memref<8x1xf32, #tpu.memory_space<vmem>>, vector<8x1xf32>
      tpu.vector_store %arg10[%c0_47, %c0_48], %71 {strides = array<i32>} : memref<8x1xf32, #tpu.memory_space<vmem>>, vector<8x1xf32>,
      %cst_49 = arith.constant -1.000000e+30 : f32
      %73 = vector.broadcast %cst_49 : f32 to vector<8x1xf32>
      %c0_50 = arith.constant 0 : index
      %c0_51 = arith.constant 0 : index
      %74 = vector.load %arg11[%c0_50, %c0_51] : memref<8x1xf32, #tpu.memory_space<vmem>>, vector<8x1xf32>
      tpu.vector_store %arg11[%c0_50, %c0_51], %73 {strides = array<i32>} : memref<8x1xf32, #tpu.memory_space<vmem>>, vector<8x1xf32>,
      %cst_52 = arith.constant 0.000000e+00 : f32
      %75 = vector.broadcast %cst_52 : f32 to vector<8x1xf32>
      %c0_53 = arith.constant 0 : index
      %c0_54 = arith.constant 0 : index
      %76 = vector.load %arg12[%c0_53, %c0_54] : memref<8x1xf32, #tpu.memory_space<vmem>>, vector<8x1xf32>
      tpu.vector_store %arg12[%c0_53, %c0_54], %75 {strides = array<i32>} : memref<8x1xf32, #tpu.memory_space<vmem>>, vector<8x1xf32>,
      %cst_55 = arith.constant 0.000000e+00 : f32
      %77 = vector.broadcast %cst_55 : f32 to vector<8x128xf32>
      %c0_56 = arith.constant 0 : index
      %c0_57 = arith.constant 0 : index
      %78 = vector.load %arg13[%c0_56, %c0_57] : memref<8x128xf32, #tpu.memory_space<vmem>>, vector<8x128xf32>
      tpu.vector_store %arg13[%c0_56, %c0_57], %77 {strides = array<i32>} : memref<8x128xf32, #tpu.memory_space<vmem>>, vector<8x128xf32>,
    } else {
    }
    %3 = tpu.iota {dimensions = array<i32: 0>} : vector<8x128xi32>
    %c0 = arith.constant 0 : index
    %c0_1 = arith.constant 0 : index
    %4 = vector.load %arg1[%c0, %c0_1] : memref<1x128xi32, #tpu.memory_space<vmem>>, vector<1x128xi32>
    %5 = vector.broadcast %4 : vector<1x128xi32> to vector<8x128xi32>
    %6 = arith.cmpi eq, %3, %5 : vector<8x128xi32>
    %c0_2 = arith.constant 0 : index
    %c0_3 = arith.constant 0 : index
    %7 = vector.load %arg2[%c0_2, %c0_3] : memref<1x128xi32, #tpu.memory_space<vmem>>, vector<1x128xi32>
    %8 = vector.broadcast %7 : vector<1x128xi32> to vector<8x128xi32>
    %9 = arith.cmpi eq, %3, %8 : vector<8x128xi32>
    %10 = arith.extui %6 : vector<8x128xi1> to vector<8x128xi32>
    %11 = arith.sitofp %10 : vector<8x128xi32> to vector<8x128xf32>
    %12 = arith.extui %9 : vector<8x128xi1> to vector<8x128xi32>
    %13 = arith.sitofp %12 : vector<8x128xi32> to vector<8x128xf32>
    %c0_4 = arith.constant 0 : index
    %c0_5 = arith.constant 0 : index
    %14 = vector.load %arg9[%c0_4, %c0_5] : memref<8x1xf32, #tpu.memory_space<vmem>>, vector<8x1xf32>
    %cst = arith.constant dense<0.000000e+00> : vector<1x128xf32>
    %15 = tpu.matmul %14, %11, %cst {dimension_numbers = #tpu.dot_dimension_numbers<[0], [0], [1], [1], [0, 1, 1, 1], [], []>} : vector<8x1xf32>, vector<8x128xf32>, vector<1x128xf32> -> vector<1x128xf32>
    %c0_6 = arith.constant 0 : index
    %c0_7 = arith.constant 0 : index
    %16 = vector.load %arg10[%c0_6, %c0_7] : memref<8x1xf32, #tpu.memory_space<vmem>>, vector<8x1xf32>
    %cst_8 = arith.constant dense<0.000000e+00> : vector<1x128xf32>
    %17 = tpu.matmul %16, %13, %cst_8 {dimension_numbers = #tpu.dot_dimension_numbers<[0], [0], [1], [1], [0, 1, 1, 1], [], []>} : vector<8x1xf32>, vector<8x128xf32>, vector<1x128xf32> -> vector<1x128xf32>
    %18 = arith.addf %15, %17 : vector<1x128xf32>
    %cst_9 = arith.constant 0.000000e+00 : f32
    %19 = vector.broadcast %cst_9 : f32 to vector<1x128xf32>
    %20 = arith.cmpf ogt, %18, %19 : vector<1x128xf32>
    %cst_10 = arith.constant 2.000000e-01 : f32
    %21 = vector.broadcast %cst_10 : f32 to vector<1x128xf32>
    %22 = arith.mulf %21, %18 : vector<1x128xf32>
    %23 = arith.select %20, %18, %22 : vector<1x128xi1>, vector<1x128xf32>
    %cst_11 = arith.constant -1.000000e+30 : f32
    %24 = vector.shape_cast %23 : vector<1x128xf32> to vector<1x128xf32>
    %25 = vector.broadcast %24 : vector<1x128xf32> to vector<8x128xf32>
    %26 = vector.broadcast %cst_11 : f32 to vector<8x128xf32>
    %27 = arith.select %6, %25, %26 : vector<8x128xi1>, vector<8x128xf32>
    %cst_12 = arith.constant dense<0xFF800000> : vector<8xf32>
    %28 = vector.multi_reduction <maximumf>, %27, %cst_12 [1] : vector<8x128xf32> to vector<8xf32>
    %29 = vector.shape_cast %28 : vector<8xf32> to vector<8x1xf32>
    %c0_13 = arith.constant 0 : index
    %c0_14 = arith.constant 0 : index
    %30 = vector.load %arg11[%c0_13, %c0_14] : memref<8x1xf32, #tpu.memory_space<vmem>>, vector<8x1xf32>
    %31 = arith.maximumf %30, %29 : vector<8x1xf32>
    %32 = arith.subf %30, %31 : vector<8x1xf32>
    %33 = math.exp %32 : vector<8x1xf32>
    %cst_15 = arith.constant dense<0.000000e+00> : vector<1x128xf32>
    %34 = tpu.matmul %31, %11, %cst_15 {dimension_numbers = #tpu.dot_dimension_numbers<[0], [0], [1], [1], [0, 1, 1, 1], [], []>} : vector<8x1xf32>, vector<8x128xf32>, vector<1x128xf32> -> vector<1x128xf32>
    %35 = arith.subf %23, %34 : vector<1x128xf32>
    %36 = math.exp %35 : vector<1x128xf32>
    %c0_16 = arith.constant 0 : index
    %c0_17 = arith.constant 0 : index
    %37 = vector.load %arg12[%c0_16, %c0_17] : memref<8x1xf32, #tpu.memory_space<vmem>>, vector<8x1xf32>
    %38 = arith.mulf %33, %37 : vector<8x1xf32>
    %cst_18 = arith.constant dense<0.000000e+00> : vector<8x1xf32>
    %39 = tpu.matmul %11, %36, %cst_18 {dimension_numbers = #tpu.dot_dimension_numbers<[1], [1], [0], [0], [0, 0, 1, 0], [], []>} : vector<8x128xf32>, vector<1x128xf32>, vector<8x1xf32> -> vector<8x1xf32>
    %40 = arith.addf %38, %39 : vector<8x1xf32>
    %c0_19 = arith.constant 0 : index
    %c0_20 = arith.constant 0 : index
    %41 = vector.load %arg12[%c0_19, %c0_20] : memref<8x1xf32, #tpu.memory_space<vmem>>, vector<8x1xf32>
    tpu.vector_store %arg12[%c0_19, %c0_20], %40 {strides = array<i32>} : memref<8x1xf32, #tpu.memory_space<vmem>>, vector<8x1xf32>,
    %42 = arith.truncf %13 : vector<8x128xf32> to vector<8x128xbf16>
    %c0_21 = arith.constant 0 : index
    %c0_22 = arith.constant 0 : index
    %43 = vector.load %arg8[%c0_21, %c0_22] : memref<8x128xf32, #tpu.memory_space<vmem>>, vector<8x128xf32>
    %44 = arith.truncf %43 : vector<8x128xf32> to vector<8x128xbf16>
    %cst_23 = arith.constant dense<0.000000e+00> : vector<128x128xf32>
    %45 = tpu.matmul %42, %44, %cst_23 {dimension_numbers = #tpu.dot_dimension_numbers<[0], [0], [1], [1], [0, 1, 1, 1], [], []>} : vector<8x128xbf16>, vector<8x128xbf16>, vector<128x128xf32> -> vector<128x128xf32>
    %46 = vector.broadcast %36 : vector<1x128xf32> to vector<8x128xf32>
    %47 = arith.mulf %11, %46 : vector<8x128xf32>
    %48 = arith.truncf %47 : vector<8x128xf32> to vector<8x128xbf16>
    %c0_24 = arith.constant 0 : index
    %c0_25 = arith.constant 0 : index
    %49 = vector.load %arg13[%c0_24, %c0_25] : memref<8x128xf32, #tpu.memory_space<vmem>>, vector<8x128xf32>
    %50 = vector.broadcast %33 : vector<8x1xf32> to vector<8x128xf32>
    %51 = arith.mulf %50, %49 : vector<8x128xf32>
    %52 = arith.truncf %45 : vector<128x128xf32> to vector<128x128xbf16>
    %cst_26 = arith.constant dense<0.000000e+00> : vector<8x128xf32>
    %53 = tpu.matmul %48, %52, %cst_26 {dimension_numbers = #tpu.dot_dimension_numbers<[1], [0], [0], [1], [0, 0, 1, 1], [], []>} : vector<8x128xbf16>, vector<128x128xbf16>, vector<8x128xf32> -> vector<8x128xf32>
    %54 = arith.addf %51, %53 : vector<8x128xf32>
    %c0_27 = arith.constant 0 : index
    %c0_28 = arith.constant 0 : index
    %55 = vector.load %arg13[%c0_27, %c0_28] : memref<8x128xf32, #tpu.memory_space<vmem>>, vector<8x128xf32>
    tpu.vector_store %arg13[%c0_27, %c0_28], %54 {strides = array<i32>} : memref<8x128xf32, #tpu.memory_space<vmem>>, vector<8x128xf32>,
    %c0_29 = arith.constant 0 : index
    %c0_30 = arith.constant 0 : index
    %56 = vector.load %arg11[%c0_29, %c0_30] : memref<8x1xf32, #tpu.memory_space<vmem>>, vector<8x1xf32>
    tpu.vector_store %arg11[%c0_29, %c0_30], %31 {strides = array<i32>} : memref<8x1xf32, #tpu.memory_space<vmem>>, vector<8x1xf32>,
    %c0_i32_31 = arith.constant 0 : i32
    %57 = arith.cmpi eq, %arg0, %c0_i32_31 : i32
    %58 = arith.extui %57 : i1 to i32
    %c0_i32_32 = arith.constant 0 : i32
    %59 = arith.cmpi ne, %58, %c0_i32_32 : i32
    scf.if %59 {
      %c0_33 = arith.constant 0 : index
      %c0_34 = arith.constant 0 : index
      %60 = vector.load %arg12[%c0_33, %c0_34] : memref<8x1xf32, #tpu.memory_space<vmem>>, vector<8x1xf32>
      %cst_35 = arith.constant 0.000000e+00 : f32
      %61 = vector.broadcast %cst_35 : f32 to vector<8x1xf32>
      %62 = arith.cmpf ogt, %60, %61 : vector<8x1xf32>
      %cst_36 = arith.constant 1.000000e+00 : f32
      %63 = vector.broadcast %cst_36 : f32 to vector<8x1xf32>
      %64 = arith.select %62, %60, %63 : vector<8x1xi1>, vector<8x1xf32>
      %c0_37 = arith.constant 0 : index
      %c0_38 = arith.constant 0 : index
      %65 = vector.load %arg13[%c0_37, %c0_38] : memref<8x128xf32, #tpu.memory_space<vmem>>, vector<8x128xf32>
      %66 = tpu.reciprocal %64 {approx = true} : vector<8x1xf32> -> vector<8x1xf32>
      %67 = vector.broadcast %66 : vector<8x1xf32> to vector<8x128xf32>
      %68 = arith.mulf %65, %67 : vector<8x128xf32>
      %c0_39 = arith.constant 0 : index
      %c0_40 = arith.constant 0 : index
      %69 = vector.load %arg8[%c0_39, %c0_40] : memref<8x128xf32, #tpu.memory_space<vmem>>, vector<8x128xf32>
      %70 = arith.addf %68, %69 : vector<8x128xf32>
      %c0_41 = arith.constant 0 : index
      %c0_42 = arith.constant 0 : index
      %71 = vector.load %arg7[%c0_41, %c0_42] : memref<8x128xf32, #tpu.memory_space<vmem>>, vector<8x128xf32>
      tpu.vector_store %arg7[%c0_41, %c0_42], %70 {strides = array<i32>} : memref<8x128xf32, #tpu.memory_space<vmem>>, vector<8x128xf32>,
    } else {
    }
    return
  }
  func.func @transform_0(%arg0: i32) -> (i32, i32) {
    %c0_i32 = arith.constant 0 : i32
    %c0_i32_0 = arith.constant 0 : i32
    return %c0_i32, %arg0 : i32, i32
  }
  func.func @transform_1(%arg0: i32) -> (i32, i32) {
    %c0_i32 = arith.constant 0 : i32
    %c0_i32_0 = arith.constant 0 : i32
    return %c0_i32, %arg0 : i32, i32
  }
  func.func @transform_2(%arg0: i32) -> (i32, i32) {
    %c0_i32 = arith.constant 0 : i32
    %c0_i32_0 = arith.constant 0 : i32
    %c0_i32_1 = arith.constant 0 : i32
    return %c0_i32, %c0_i32_0 : i32, i32
  }
  func.func @transform_3(%arg0: i32) -> (i32, i32) {
    %c0_i32 = arith.constant 0 : i32
    %c0_i32_0 = arith.constant 0 : i32
    %c0_i32_1 = arith.constant 0 : i32
    return %c0_i32, %c0_i32_0 : i32, i32
  }
  func.func @transform_4(%arg0: i32) -> (i32, i32) {
    %c0_i32 = arith.constant 0 : i32
    %c0_i32_0 = arith.constant 0 : i32
    %c0_i32_1 = arith.constant 0 : i32
    return %c0_i32, %c0_i32_0 : i32, i32
  }
  func.func @transform_5(%arg0: i32) -> (i32, i32) {
    %c0_i32 = arith.constant 0 : i32
    %c0_i32_0 = arith.constant 0 : i32
    %c0_i32_1 = arith.constant 0 : i32
    return %c0_i32, %c0_i32_0 : i32, i32
  }
  func.func @transform_6(%arg0: i32) -> (i32, i32) {
    %c0_i32 = arith.constant 0 : i32
    %c0_i32_0 = arith.constant 0 : i32
    %c0_i32_1 = arith.constant 0 : i32
    return %c0_i32, %c0_i32_0 : i32, i32
  }
}

</mosaic_0001>

<bundles_post_ra>
// kernel: tpu_custom_call.1
= control target key start
LH: loop header
LB: loop body
LE: loop exit
PB: predicated region body
PF: predicated region fallthrough
CT: control target
= control target key end

     0   :  { %vm42_vm0 = vcmask 1043456   ;;  %v1037_v2 = vmov 0.0   ;;  %vm1038_vm1 = vmmov 0   ;;  %vm38_vm2 = vcmask 31744   ;;  %s1240_s0 = inlined_call_operand.vmem [shape: s32[1,128], index: 0, kind: input, shape index: {}]   ;;  %s1241_s1 = inlined_call_operand.vmem [shape: s32[1,128], index: 1, kind: input, shape index: {}]   ;;  %s1242_s2 = inlined_call_operand.vmem [shape: f32[8,4], index: 2, kind: input, shape index: {}]   ;;  %s1243_s3 = inlined_call_operand.vmem [shape: f32[4,128], index: 3, kind: input, shape index: {}]   ;;  %s1244_s4 = inlined_call_operand.vmem [shape: f32[1,128], index: 4, kind: input, shape index: {}]   ;;  %s1245_s5 = inlined_call_operand.vmem [shape: f32[128,2], index: 5, kind: input, shape index: {}]   ;;  %s1246_s6 = inlined_call_operand.hbm [shape: f32[8,128], index: 6, kind: output, shape index: {}]  }
   0x1   :  { %v30_v0 = vld [vmem:[%s1243_s3] sm:$0xf]  ;;  %877 = vmatprep.subr.mxu1 %v1037_v2  ;;  %879 = vmatprep.mubr.msk.f32.mxu1 %vm1038_vm1, %v1037_v2  ;;  %v118_v4 = vld [vmem:[%s1245_s5 + $0x8] sm:$0xff]  ;;  %v119_v5 = vld [vmem:[%s1245_s5 + $0x10] sm:$0xff]  ;;  %v1039_v8 = vmov 0.0|0.0  }
   0x2   :  { %v29_v1 = vld [vmem:[%s1242_s2] sm:$0xff]  ;;  %878 = vmatpush3.msk.msra.mxu1 %vm42_vm0, %v30_v0  ;;  %v120_v7 = vld [vmem:[%s1245_s5 + $0x18] sm:$0xff]  ;;  %927 = vmatprep.subr.mxu0 %v1037_v2  ;;  %v122_v11 = vld [vmem:[%s1245_s5 + $0x28] sm:$0xff] }
   0x3   :  { %v117_v3 = vld [vmem:[%s1245_s5] sm:$0xff]  ;;  %880 = vmatmul.mubr.msk.f32.vlgmr.msra.gmra.mrb[0].mxu1 %vm38_vm2, %v29_v1  ;;  %970 = vmatprep.subr.bf16.mxu1 %v1039_v8  ;;  %v974_v9 = vpack.c.bf16 %v120_v7, %v119_v5 }
   0x4   :  { %v971_v6 = vpack.c.bf16 %v118_v4, %v117_v3  ;;  %914 = vmatprep.mubr.msk.f32.mxu1 %vm1038_vm1, %v1037_v2  ;;  %v121_v10 = vld [vmem:[%s1245_s5 + $0x20] sm:$0xff]  ;;  %929 = vmatprep.mubr.msk.f32.mxu0 %vm1038_vm1, %v1037_v2 }
   0x6   :  { %972 = vmatpush3.bf16.msra.mxu1 %v971_v6 }
   0x7   :  { %973 = vmatprep.subr.bf16.mxu1 %v1039_v8 }
   0x8   :  { %11 = vsyncpa [#allocation9], 0  ;;  %v977_v12 = vpack.c.bf16 %v122_v11, %v121_v10  ;;  %v123_v13 = vld [vmem:[%s1245_s5 + $0x30] sm:$0xff]  ;;  %v124_v14 = vld [vmem:[%s1245_s5 + $0x38] sm:$0xff]  ;;  %v213_v28 = vlaneseq  ;;  %v1040_v31 = vmov 1.0   ;;  %vm203_vm4 = vcmask 7168  }
   0x9   :  { %v980_v15 = vpack.c.bf16 %v124_v14, %v123_v13  ;;  %v125_v16 = vld [vmem:[%s1245_s5 + $0x40] sm:$0xff]  ;;  %v126_v17 = vld [vmem:[%s1245_s5 + $0x48] sm:$0xff]  ;;  %v127_v19 = vld [vmem:[%s1245_s5 + $0x50] sm:$0xff]  ;;  %211 = vst.msk [vmem:[#allocation6] sm:$0xff] %vm203_vm4, %v1037_v2  ;;  %s1041_s8 = smov 127   ;;  %vm265_vm6 = vcmask 64512  }
   0xa   :  { %975 = vmatpush3.bf16.msra.mxu1 %v974_v9  ;;  %v983_v18 = vpack.c.bf16 %v126_v17, %v125_v16  ;;  %v128_v20 = vld [vmem:[%s1245_s5 + $0x58] sm:$0xff]  ;;  %v129_v22 = vld [vmem:[%s1245_s5 + $0x60] sm:$0xff]  ;;  %v130_v23 = vld [vmem:[%s1245_s5 + $0x68] sm:$0xff]  ;;  %v1143_v29 = vshrl.u32 %v213_v28, 7  ;;  %v1042_v45 = vmov -1e+30  }
   0xb   :  { %976 = vmatprep.subr.bf16.mxu1 %v1039_v8  ;;  %v986_v21 = vpack.c.bf16 %v128_v20, %v127_v19  ;;  %v989_v24 = vpack.c.bf16 %v130_v23, %v129_v22  ;;  %v131_v25 = vld [vmem:[%s1245_s5 + $0x70] sm:$0xff]  ;;  %v132_v26 = vld [vmem:[%s1245_s5 + $0x78] sm:$0xff]  ;;  %v1149_v30 = vld [vmem:[%s1240_s0] ss:$0 sm:$0xff]  ;;  %210 = vst.msk [vmem:[#allocation5] sm:$0xff] %vm203_vm4, %v1042_v45  ;;  %v1043_v55 = vmov 0  }
   0xc   :  { %v992_v27 = vpack.c.bf16 %v132_v26, %v131_v25  ;;  %vm220_vm3 = vcmp.eq.s32.totalorder %v1143_v29, %v1149_v30  ;;  %v813_v32 = vld [vmem:[%s1244_s4] ss:$0 sm:$0xff]  ;;  %v449_v47 = vsub.s32 0, %v1143_v29 }
   0xd   :  { %928 = vmatpush3.msk.msra.mxu0 %vm220_vm3, %v1040_v31  ;;  %v817_v37 = vld [vmem:[%s1241_s1] ss:$0 sm:$0xff]  ;;  %v818_v25 = vsel %vm220_vm3, 1.0, %v1037_v2  ;;  %s1044_s1 = smov [#allocation8]  }
   0xe   :  { %978 = vmatpush3.bf16.msra.mxu1 %v977_v12  ;;  %vm226_vm5 = vcmp.eq.s32.totalorder %v1143_v29, %v817_v37  ;;  %s805_s9 = sshll.u32 %s1044_s1, 4  ;;  %s806_s9 = int_to_ptr.vmem [resolvable:$true] %s805_s9 }
   0xf   :  { %979 = vmatprep.subr.bf16.mxu1 %v1039_v8  ;;  %v819_v53 = vsel %vm226_vm5, 1.0, %v1037_v2  ;;  %s1013_s10 = scalar_lea.vmem %s806_s9, 128  ;;  %p1018_p1 = scmp.lt.s32.totalorder %s806_s9, %s806_s9 }
  0x10   :  { %v579_v54 = vpack.c.bf16 %v819_v53, %v819_v53  ;;  %p1014_p0 = scmp.ne.s32.totalorder %s806_s9, %s1013_s10  ;;  %p1019_p2 = scmp.lt.s32.totalorder %s1013_s10, %s1013_s10 }
  0x12   :  { %981 = vmatpush3.bf16.msra.mxu1 %v980_v15  ;;  %v454_v56 = vld [vmem:[#allocation5] sm:$0xff]  ;;  %p1020_p3 = por %p1019_p2, %p1018_p1 }
  0x13   :  { %982 = vmatprep.subr.bf16.mxu1 %v1039_v8 }
  0x14   :  { %p1021_p4 = pnand %p1020_p3, %p1014_p0 }
  0x16   :  { %984 = vmatpush3.bf16.msra.mxu1 %v983_v18 }
  0x17   :  { %985 = vmatprep.subr.bf16.mxu1 %v1039_v8 }
  0x1a   :  { %987 = vmatpush3.bf16.msra.mxu1 %v986_v21 }
  0x1b   :  { %988 = vmatprep.subr.bf16.mxu1 %v1039_v8 }
  0x1e   :  { %990 = vmatpush3.bf16.msra.mxu1 %v989_v24 }
  0x1f   :  { %991 = vmatprep.subr.bf16.mxu1 %v1039_v8 }
  0x22   :  { %993 = vmatpush3.bf16.msra.mxu1 %v992_v27 }
  0x23   :  { %917 = vmatprep.subr.mxu1 %v1037_v2 }
  0xd6   :  { %v112_v33 = vpop.f32.mrb[0].mxu1 }
  0xd7   :  { %v1159_v34 = vadd.f32 %v813_v32, %v112_v33  ;;  %v881_v35 = vpop.f32.mrb[1].mxu1 }
  0xd9   :  { %v581_v36 = vpack.c.bf16 %v1159_v34, %v1159_v34  ;;  %915 = vmatmul.mubr.f32.vlgmr.msra.gmra.mrb[2].mxu1 %v1159_v34 }
  0xda   :  { %919 = vmatprep.mubr.msk.f32.mxu1 %vm1038_vm1, %v1037_v2  ;;  %918 = vmatpush3.msk.msra.mxu1 %vm226_vm5, %v1040_v31 }
  0xdb   :  { %996 = vmatprep.subr.msk.bf16.mxu0 %vm42_vm0, %v581_v36  ;;  %922 = vmatprep.subr.mxu1 %v1037_v2  ;;  %v624_v3 = vsel %vm42_vm0, %v581_v36, 0 }
 0x1ac   :  { %v199_v38 = vpop.f32.mrb[2].mxu1 }
 0x1ad   :  { %204 = vst.msk [vmem:[#allocation3] sm:$0xff] %vm203_vm4, %v199_v38  ;;  %206 = vrot.lane.b32.xlu0 %v199_v38, %s1041_s8  ;;  %v916_v39 = vpop.f32.mrb[3].mxu1 }
 0x1b4   :  { %v231_v40 = vld [vmem:[#allocation3] sm:$0xff] }
 0x1b5   :  { %339 = vxpose.xlu1.b32.start.end [1/1] (short) (narrow) %v231_v40, 8 }
 0x21f   :  { %v207_v41 = vpop.permute.xlu0 %206 }
 0x220   :  { %209 = vst.msk [vmem:[#allocation4] sm:$0xff] %vm203_vm4, %v207_v41 }
 0x227   :  { %v232_v42 = vld [vmem:[#allocation4] sm:$0xff] }
 0x228   :  { %233 = vxpose.xlu0.b32.start.end [1/1] (short) (narrow) %v232_v42, 8 }
 0x235   :  { %v355_v44 = vpop.trf.xlu1 }
 0x24c   :  { %582 = vxpose.xlu0.c.b16.start.end [1/1] (short) %v579_v54, 128 }
 0x255   :  { %1006 = vset.pattern.permute.xlu0 %v1043_v55 }
 0x2a8   :  { %v249_v43 = vpop.trf.xlu0 }
 0x2a9   :  { %920 = vmatmul.mubr.msk.f32.vlgmr.msra.gmra.mrb[4].mxu1 %vm265_vm6, %v249_v43  ;;  %v567_v43 = vld [vmem:[#allocation6] sm:$0xff] }
 0x2aa   :  { %923 = vmatpush3.msk.msra.mxu1 %vm220_vm3, %v1040_v31  ;;  %924 = vmatprep.mubr.msk.f32.mxu1 %vm1038_vm1, %v1037_v2 }
 0x2b1   :  { %925 = vmatmul.mubr.msk.f32.vlgmr.msra.gmra.mrb[4].mxu1 %vm265_vm6, %v355_v44 }
 0x2b2   :  { %v590_v62 = vpop.trf.xlu0 }
 0x2b6   :  { %v591_v63 = vpop.trf.xlu0 }
 0x2ba   :  { %v592_v0 = vpop.trf.xlu0 }
 0x2be   :  { %v593_v4 = vpop.trf.xlu0 }
 0x2c2   :  { %v594_v5 = vpop.trf.xlu0 }
 0x2c6   :  { %v595_v6 = vpop.trf.xlu0 }
 0x2ca   :  { %v596_v7 = vpop.trf.xlu0 }
 0x2ce   :  { %v597_v8 = vpop.trf.xlu0 }
 0x384   :  { %v440_v46 = vpop.f32.mrb[4].mxu1 }
 0x385   :  { %vm444_vm7 = vcmp.gt.f32.partialorder %v440_v46, 0.0  ;;  %v445_v48 = vmul.f32 0.2, %v440_v46  ;;  %v926_v49 = vpop.f32.mrb[5].mxu1 }
 0x387   :  { %v446_v50 = vsel %vm444_vm7, %v440_v46, %v445_v48 }
 0x388   :  { %v450_v51 = vrot.slane %v446_v50, %v449_v47 }
 0x38a   :  { %v451_v52 = vsel %vm220_vm3, %v450_v51, -1e+30 }
 0x38b   :  { %452 = vmax.xlane.f32.xlu1 %v451_v52 }
 0x418   :  { %v453_v57 = vpop.xlane.xlu1 %452 }
 0x419   :  { %v455_v58 = vmax.f32 %v454_v56, %v453_v57 }
 0x41b   :  { %781 = vst.msk [vmem:[#allocation5] sm:$0xff] %vm203_vm4, %v455_v58  ;;  %459 = vxpose.xlu1.b32.start.end [1/1] (short) (narrow) %v455_v58, 8  ;;  %v456_v59 = vsub.f32 %v454_v56, %v455_v58 }
 0x41d   :  { %v457_v60 = vmul.f32 1.442695, %v456_v59 }
 0x41f   :  { %1007 = vpow2.f32 %v457_v60 }
 0x429   :  { %v1196_v61 = vpop.eup %1007 }
 0x42a   :  { %v568_v44 = vmul.f32 %v1196_v61, %v567_v43 }
 0x439   :  { %1005 = vset.pattern.permute.xlu1 %v1043_v55 }
 0x43a   :  { %727 = vperm.xlu1 %1005, %v1196_v61  }
 0x49b   :  { %v475_v1 = vpop.trf.xlu1 }
 0x49c   :  { %930 = vmatmul.mubr.msk.f32.vlgmr.msra.gmra.mrb[0].mxu0 %vm265_vm6, %v475_v1 }
 0x49d   :  { %933 = vmatpush3.bf16.msra.mxu0 %v624_v3  ;;  %934 = vmatprep.mubr.msk.bf16.mxu0 %vm265_vm6, %v590_v62 }
 0x49e   :  { %950 = vmatprep.subr.bf16.mxu0 %v1037_v2 }
 0x4a0   :  { %935 = vmatmul.mubr.msk.bf16.vlgmr.msra.gmra.mrb[4].mxu0 %vm265_vm6, %v591_v63 }
 0x4a1   :  { %938 = vmatprep.mubr.msk.bf16.mxu0 %vm265_vm6, %v592_v0 }
 0x4a8   :  { %939 = vmatmul.mubr.msk.bf16.gmra.mrb[8].mxu0 %vm265_vm6, %v593_v4 }
 0x4a9   :  { %942 = vmatprep.mubr.msk.bf16.mxu0 %vm265_vm6, %v594_v5 }
 0x4b0   :  { %943 = vmatmul.mubr.msk.bf16.gmra.mrb[12].mxu0 %vm265_vm6, %v595_v6 }
 0x4b1   :  { %946 = vmatprep.mubr.msk.bf16.mxu0 %vm265_vm6, %v596_v7 }
 0x4b8   :  { %947 = vmatmul.mubr.msk.bf16.gmra.mrb[16].mxu0 %vm265_vm6, %v597_v8 }
 0x4b9   :  { %966 = vmatprep.mubr.msk.bf16.mxu0 %vm1038_vm1, %v1037_v2  ;;  %v728_v53 = vpop.permute.xlu1 %727 }
 0x4ba   :  { %v730_v54 = vmul.f32 0.0, %v728_v53 }
 0x56f   :  { %v560_v9 = vpop.f32.mrb[0].mxu0 }
 0x570   :  { %v564_v10 = vsub.f32 %v446_v50, %v560_v9  ;;  %v931_v11 = vpop.f32.mrb[1].mxu0 }
 0x572   :  { %v565_v12 = vmul.f32 1.442695, %v564_v10 }
 0x573   :  { %v936_v13 = vpop.f32.mrb[4].mxu0 }
 0x574   :  { %1009 = vpow2.f32 %v565_v12  ;;  %v660_v14 = vpop.f32.mrb[5].mxu0 }
 0x575   :  { %v937_v15 = vpop.f32.mrb[6].mxu0 }
 0x576   :  { %v732_v16 = vpack.c.bf16 %v937_v15, %v936_v13  ;;  %v663_v17 = vpop.f32.mrb[7].mxu0 }
 0x577   :  { %v731_v18 = vpack.c.bf16 %v663_v17, %v660_v14 }
 0x579   :  { %951 = vmatpush3.bf16.msra.mxu0 %v731_v18 }
 0x57a   :  { %952 = vmatprep.subr.bf16.mxu0 %v1037_v2 }
 0x57b   :  { %v940_v19 = vpop.f32.mrb[8].mxu0 }
 0x57c   :  { %v676_v20 = vpop.f32.mrb[9].mxu0 }
 0x57d   :  { %v941_v21 = vpop.f32.mrb[10].mxu0  ;;  %953 = vmatpush3.bf16.msra.mxu0 %v732_v16 }
 0x57e   :  { %v1010_v22 = vpop.eup %1009  ;;  %v734_v23 = vpack.c.bf16 %v941_v21, %v940_v19  ;;  %v679_v24 = vpop.f32.mrb[11].mxu0  ;;  %954 = vmatprep.subr.bf16.mxu0 %v1037_v2 }
 0x57f   :  { %v733_v26 = vpack.c.bf16 %v679_v24, %v676_v20  ;;  %v572_v27 = vrot.slane %v1010_v22, %v449_v47 }
 0x581   :  { %955 = vmatpush3.bf16.msra.mxu0 %v733_v26  ;;  %v573_v28 = vmul.f32 %v818_v25, %v572_v27 }
 0x582   :  { %956 = vmatprep.subr.bf16.mxu0 %v1037_v2 }
 0x583   :  { %574 = vadd.xlane.f32.xlu0 %v573_v28  ;;  %v944_v31 = vpop.f32.mrb[12].mxu0  ;;  %v723_v42 = vpack.c.bf16 %v573_v28, %v573_v28 }
 0x584   :  { %v692_v32 = vpop.f32.mrb[13].mxu0 }
 0x585   :  { %v945_v33 = vpop.f32.mrb[14].mxu0  ;;  %957 = vmatpush3.bf16.msra.mxu0 %v734_v23 }
 0x586   :  { %v736_v35 = vpack.c.bf16 %v945_v33, %v944_v31  ;;  %v695_v36 = vpop.f32.mrb[15].mxu0  ;;  %958 = vmatprep.subr.bf16.mxu0 %v1037_v2 }
 0x587   :  { %v735_v37 = vpack.c.bf16 %v695_v36, %v692_v32 }
 0x589   :  { %959 = vmatpush3.bf16.msra.mxu0 %v735_v37 }
 0x58a   :  { %960 = vmatprep.subr.bf16.mxu0 %v1037_v2 }
 0x58b   :  { %v948_v30 = vpop.f32.mrb[16].mxu0 }
 0x58c   :  { %v708_v29 = vpop.f32.mrb[17].mxu0 }
 0x58d   :  { %v949_v38 = vpop.f32.mrb[18].mxu0  ;;  %961 = vmatpush3.bf16.msra.mxu0 %v736_v35 }
 0x58e   :  { %v738_v39 = vpack.c.bf16 %v949_v38, %v948_v30  ;;  %v711_v40 = vpop.f32.mrb[19].mxu0  ;;  %962 = vmatprep.subr.bf16.mxu0 %v1037_v2 }
 0x58f   :  { %v737_v41 = vpack.c.bf16 %v711_v40, %v708_v29 }
 0x591   :  { %963 = vmatpush3.bf16.msra.mxu0 %v737_v41 }
 0x592   :  { %964 = vmatprep.subr.bf16.mxu0 %v1037_v2 }
 0x595   :  { %965 = vmatpush3.bf16.msra.mxu0 %v738_v39 }
 0x598   :  { %967 = vmatmul.mubr.bf16.vlgmr.msra.gmra.mrb[20].mxu0 %v723_v42 }
 0x610   :  { %v575_v45 = vpop.xlane.xlu0 %574 }
 0x611   :  { %v576_v46 = vadd.f32 %v575_v45, %v568_v44 }
 0x613   :  { %578 = vst.msk [vmem:[#allocation6] sm:$0xff] %vm203_vm4, %v576_v46 }
 0x61a   :  { %v785_v47 = vld [vmem:[#allocation6] sm:$0xff] }
 0x61b   :  { %vm786_vm8 = vcmp.gt.f32.partialorder %v785_v47, 0.0 }
 0x61c   :  { %v787_v48 = vsel %vm786_vm8, %v785_v47, 1.0 }
 0x61d   :  { %1011 = vrcp.f32 %v787_v48 }
 0x627   :  { %v1012_v49 = vpop.eup %1011 }
 0x628   :  { %792 = vperm.xlu0 %1006, %v1012_v49  }
 0x66b   :  { %v773_v50 = vpop.f32.mrb[20].mxu0 }
 0x66c   :  { %v968_v51 = vpop.f32.mrb[21].mxu0  ;;  %v779_v55 = vadd.f32 %v773_v50, %v730_v54 }
 0x66d   :  { %v776_v52 = vpop.f32.mrb[22].mxu0 }
 0x66e   :  { %v969_v2 = vpop.f32.mrb[23].mxu0 }
 0x6a7   :  { %v793_v56 = vpop.permute.xlu0 %792 }
 0x6a8   :  { %v795_v57 = vmul.f32 %v793_v56, %v779_v55 }
 0x6aa   :  { %v797_v58 = vadd.f32 %v795_v57, %v1159_v34 }
 0x6ac   :  { %798 = vst [vmem:[#allocation8] sm:$0xff] %v797_v58 }
 0x6ad   :  { %1024 = shalt.err (!%p1021_p4)
}
 0x6ae   :  { %s1025_s13 = scalar_lea.hbm %s1246_s6, 128 }
 0x6af   :  { %p1026_p5 = scmp.ne.s32.totalorder %s1246_s6, %s1025_s13  ;;  %p1029_p6 = scmp.lt.u32.totalorder %s1025_s13, %s1246_s6 }
 0x6b1   :  { %p1031_p7 = pnand %p1029_p6, %p1026_p5 }
 0x6b3   :  { %1034 = shalt.err (!%p1031_p7)
}
 0x6b4   :  { %808 = dma.vmem_to_hbm [thread:$0]  %s806_s9, 128, %s1246_s6, [#allocation9]  }
 0x6b5   :  { %1035 = dma.done.wait [#allocation9], 128  }
 0x6b6   :  { %1036 = vsyncadd [#allocation9], 4294967168 }
 0x6b7   :  { %812 = vsyncpa [#allocation9], 1 }

</bundles_post_ra>
